<compile_context>
chip_gen: v7x
topology: tpu7x:2x2x1
jax: 0.10.0
libtpu: 0.0.40
codegen_flags: <defaults>
</compile_context>

<pallas_src>
import jax
import jax.numpy as jnp
from jax.experimental import pallas as pl
from jax.experimental.pallas import tpu as pltpu


def _round_up(x, m):
    return ((x + m - 1) // m) * m


def _qnet_kernel(x_ref, w1_ref, b1_ref, w2_ref, b2_ref, o_ref):
    # h = relu(x @ W1 + b1); y = h @ W2 + b2, all on one (tb, 128) tile.
    h = jnp.dot(x_ref[...], w1_ref[...], preferred_element_type=jnp.float32)
    h = jnp.maximum(h + b1_ref[...].astype(jnp.float32), 0.0)
    y = jnp.dot(h.astype(w2_ref.dtype), w2_ref[...],
                preferred_element_type=jnp.float32)
    o_ref[...] = (y + b2_ref[...].astype(jnp.float32)).astype(o_ref.dtype)


def pack_params(w1, b1, w2, b2, h_pad=128, o_pad=128):
    """Pad parameters once at init/update time.

    w1: [In, H], b1: [H], w2: [H, O], b2: [O]  (weights stored transposed
    relative to PyTorch, i.e. [in_features, out_features]).

    Returns:
      w1p [In, h_pad]      -- no K padding: the first matmul contracts over In.
      b1p [1, h_pad]
      w2p [h_pad, o_pad]
      b2p [1, o_pad]
    Padded hidden columns of w1p/b1p are zero, so relu gives exactly 0 there and
    the zero rows of w2p keep them inert.  Padded output lanes are zero too.
    """
    In, H = w1.shape
    H2, O = w2.shape
    assert H2 == H
    assert H <= h_pad and O <= o_pad

    w1p = jnp.zeros((In, h_pad), w1.dtype).at[:, :H].set(w1)
    b1p = jnp.zeros((1, h_pad), b1.dtype).at[0, :H].set(b1)
    w2p = jnp.zeros((h_pad, o_pad), w2.dtype).at[:H, :O].set(w2)
    b2p = jnp.zeros((1, o_pad), b2.dtype).at[0, :O].set(b2)
    return w1p, b1p, w2p, b2p


def _pick_batch_tile(B):
    """Pick (tb, b_pad): batch tile and padded batch size (both multiples of 8).

    <= 256 rows: one grid step (whole batch in one tile) -> minimal fixed cost.
    >  256 rows: ~2 steps (one per v7x TensorCore), tile capped at 1024 rows;
                 VMEM footprint at tb=1024 is still only a few MiB.
    """
    b8 = _round_up(max(B, 1), 8)
    if b8 <= 256:
        return b8, b8
    tb = min(_round_up(pl.cdiv(b8, 2), 8), 1024)
    return tb, _round_up(b8, tb)


def linearen_qnet_forward(x, w1p, b1p, w2p, b2p, output_size):
    """x: [B, In] -> [B, output_size], using padded params from pack_params.

    Call this inside jit so the batch pad / output slice fuse with neighbors.
    """
    B, In = x.shape
    In_w, h_pad = w1p.shape
    assert In_w == In
    h_pad2, o_pad = w2p.shape
    assert h_pad2 == h_pad
    assert b1p.shape == (1, h_pad) and b2p.shape == (1, o_pad)

    tb, b_pad = _pick_batch_tile(B)
    # Only the batch axis is padded (rows B..b_pad are zeros; their outputs are
    # meaningless and sliced off below).  No 128-lane input padding in HBM.
    xp = x if b_pad == B else jnp.pad(x, ((0, b_pad - B), (0, 0)))

    itemsize = jnp.dtype(x.dtype).itemsize
    flops = 2 * b_pad * h_pad * (In + o_pad)
    bytes_accessed = itemsize * (b_pad * In + In * h_pad + h_pad
                                 + h_pad * o_pad + o_pad + b_pad * o_pad)

    out = pl.pallas_call(
        _qnet_kernel,
        out_shape=jax.ShapeDtypeStruct((b_pad, o_pad), x.dtype),
        grid=(b_pad // tb,),
        in_specs=[
            pl.BlockSpec((tb, In), lambda i: (i, 0)),        # x at real width
            pl.BlockSpec((In, h_pad), lambda i: (0, 0)),     # W1 (grid-invariant)
            pl.BlockSpec((1, h_pad), lambda i: (0, 0)),      # b1
            pl.BlockSpec((h_pad, o_pad), lambda i: (0, 0)),  # W2 (grid-invariant)
            pl.BlockSpec((1, o_pad), lambda i: (0, 0)),      # b2
        ],
        # Lane-dense 128-wide output: unmasked vector stores on every chip.
        out_specs=pl.BlockSpec((tb, o_pad), lambda i: (i, 0)),
        compiler_params=pltpu.CompilerParams(
            dimension_semantics=("parallel",),  # batch axis -> both TCs on v7x
        ),
        cost_estimate=pl.CostEstimate(
            flops=flops, transcendentals=0, bytes_accessed=bytes_accessed),
    )(xp, w1p, b1p, w2p, b2p)

    return out[:B, :output_size]


def init_params(key, input_size, hidden_size, output_size):
    """Deterministic init mirroring nn.Linear (uniform +/- 1/sqrt(fan_in))."""
    k1, k2, k3, k4 = jax.random.split(key, 4)
    lim1 = 1.0 / jnp.sqrt(jnp.float32(input_size))
    lim2 = 1.0 / jnp.sqrt(jnp.float32(hidden_size))
    # Stored as [in, out] (i.e. PyTorch weight transposed).
    w1 = jax.random.uniform(k1, (input_size, hidden_size), jnp.float32, -lim1, lim1)
    b1 = jax.random.uniform(k2, (hidden_size,), jnp.float32, -lim1, lim1)
    w2 = jax.random.uniform(k3, (hidden_size, output_size), jnp.float32, -lim2, lim2)
    b2 = jax.random.uniform(k4, (output_size,), jnp.float32, -lim2, lim2)
    return w1, b1, w2, b2


# TODO(synk): zacuvaj() (torch.save checkpointing) is host-side file I/O with no
# Pallas equivalent; omitted.

if __name__ == "__main__":
    # Snake-agent sizes: input=11 features, hidden=32, output=3 actions.
    input_size, hidden_size, output_size = 11, 32, 3

    key = jax.random.PRNGKey(0)
    kx, kp, kb = jax.random.split(key, 3)
    w1, b1, w2, b2 = init_params(kp, input_size, hidden_size, output_size)
    w1p, b1p, w2p, b2p = pack_params(w1, b1, w2, b2)

    # Keep the wrapper under jit so the batch pad and output slice fuse with
    # the surrounding computation instead of being standalone HBM round-trips.
    fwd = jax.jit(
        lambda x: linearen_qnet_forward(x, w1p, b1p, w2p, b2p, output_size))

    def reference(x):
        return jnp.maximum(x @ w1 + b1, 0.0) @ w2 + b2

    # Tiny single-step batch (one 8-row tile, one grid step).
    x_small = jax.random.normal(kx, (2, input_size), jnp.float32)
    out_small = jax.block_until_ready(fwd(x_small))
    assert out_small.shape == (2, output_size)
    assert jnp.allclose(out_small, reference(x_small), atol=1e-5, rtol=1e-5)

    # Replay-minibatch batch: > 256 rows -> two "parallel" grid steps (one per
    # v7x TensorCore); ragged batch (300 -> 304) exercises row padding.
    x_big = jax.random.normal(kb, (300, input_size), jnp.float32)
    out_big = jax.block_until_ready(fwd(x_big))
    assert out_big.shape == (300, output_size)
    assert jnp.allclose(out_big, reference(x_big), atol=1e-5, rtol=1e-5)

    print("KERNEL_OK")
</pallas_src>

<mosaic_0001>
module attributes {stable_mosaic.version = 11 : i64} {
  func.func @_qnet_kernel(%arg0: i32, %arg1: memref<8x11xf32, #tpu.memory_space<vmem>>, %arg2: memref<11x128xf32, #tpu.memory_space<vmem>>, %arg3: memref<1x128xf32, #tpu.memory_space<vmem>>, %arg4: memref<128x128xf32, #tpu.memory_space<vmem>>, %arg5: memref<1x128xf32, #tpu.memory_space<vmem>>, %arg6: memref<8x128xf32, #tpu.memory_space<vmem>>) attributes {dimension_semantics = [#tpu.dimension_semantics<parallel>], iteration_bounds = array<i64: 1>, scalar_prefetch = 0 : i64, scratch_operands = 0 : i64, tpu.core_type = #tpu.core_type<tc>, window_params = [{transform_indices = @transform_0, window_bounds = array<i64: 8, 11>}, {pipeline_mode = #tpu.pipeline_mode<synchronous>, transform_indices = @transform_1, window_bounds = array<i64: 11, 128>}, {pipeline_mode = #tpu.pipeline_mode<synchronous>, transform_indices = @transform_2, window_bounds = array<i64: 1, 128>}, {pipeline_mode = #tpu.pipeline_mode<synchronous>, transform_indices = @transform_3, window_bounds = array<i64: 128, 128>}, {pipeline_mode = #tpu.pipeline_mode<synchronous>, transform_indices = @transform_4, window_bounds = array<i64: 1, 128>}, {transform_indices = @transform_5, window_bounds = array<i64: 8, 128>}]} {
    %c0 = arith.constant 0 : index
    %c0_0 = arith.constant 0 : index
    %0 = vector.load %arg1[%c0, %c0_0] : memref<8x11xf32, #tpu.memory_space<vmem>>, vector<8x11xf32>
    %c0_1 = arith.constant 0 : index
    %c0_2 = arith.constant 0 : index
    %1 = vector.load %arg2[%c0_1, %c0_2] : memref<11x128xf32, #tpu.memory_space<vmem>>, vector<11x128xf32>
    %cst = arith.constant dense<0.000000e+00> : vector<8x128xf32>
    %2 = tpu.matmul %0, %1, %cst {dimension_numbers = #tpu.dot_dimension_numbers<[1], [0], [0], [1], [0, 0, 1, 1], [], []>} : vector<8x11xf32>, vector<11x128xf32>, vector<8x128xf32> -> vector<8x128xf32>
    %c0_3 = arith.constant 0 : index
    %c0_4 = arith.constant 0 : index
    %3 = vector.load %arg3[%c0_3, %c0_4] : memref<1x128xf32, #tpu.memory_space<vmem>>, vector<1x128xf32>
    %4 = vector.broadcast %3 : vector<1x128xf32> to vector<8x128xf32>
    %5 = arith.addf %2, %4 : vector<8x128xf32>
    %cst_5 = arith.constant 0.000000e+00 : f32
    %6 = vector.broadcast %cst_5 : f32 to vector<8x128xf32>
    %7 = arith.maximumf %5, %6 : vector<8x128xf32>
    %c0_6 = arith.constant 0 : index
    %c0_7 = arith.constant 0 : index
    %8 = vector.load %arg4[%c0_6, %c0_7] : memref<128x128xf32, #tpu.memory_space<vmem>>, vector<128x128xf32>
    %cst_8 = arith.constant dense<0.000000e+00> : vector<8x128xf32>
    %9 = tpu.matmul %7, %8, %cst_8 {dimension_numbers = #tpu.dot_dimension_numbers<[1], [0], [0], [1], [0, 0, 1, 1], [], []>} : vector<8x128xf32>, vector<128x128xf32>, vector<8x128xf32> -> vector<8x128xf32>
    %c0_9 = arith.constant 0 : index
    %c0_10 = arith.constant 0 : index
    %10 = vector.load %arg5[%c0_9, %c0_10] : memref<1x128xf32, #tpu.memory_space<vmem>>, vector<1x128xf32>
    %11 = vector.broadcast %10 : vector<1x128xf32> to vector<8x128xf32>
    %12 = arith.addf %9, %11 : vector<8x128xf32>
    %c0_11 = arith.constant 0 : index
    %c0_12 = arith.constant 0 : index
    %13 = vector.load %arg6[%c0_11, %c0_12] : memref<8x128xf32, #tpu.memory_space<vmem>>, vector<8x128xf32>
    tpu.vector_store %arg6[%c0_11, %c0_12], %12 {strides = array<i32>} : memref<8x128xf32, #tpu.memory_space<vmem>>, vector<8x128xf32>,
    return
  }
  func.func @transform_0(%arg0: i32) -> (i32, i32) {
    %c0_i32 = arith.constant 0 : i32
    %c0_i32_0 = arith.constant 0 : i32
    return %arg0, %c0_i32 : i32, i32
  }
  func.func @transform_1(%arg0: i32) -> (i32, i32) {
    %c0_i32 = arith.constant 0 : i32
    %c0_i32_0 = arith.constant 0 : i32
    %c0_i32_1 = arith.constant 0 : i32
    return %c0_i32, %c0_i32_0 : i32, i32
  }
  func.func @transform_2(%arg0: i32) -> (i32, i32) {
    %c0_i32 = arith.constant 0 : i32
    %c0_i32_0 = arith.constant 0 : i32
    %c0_i32_1 = arith.constant 0 : i32
    return %c0_i32, %c0_i32_0 : i32, i32
  }
  func.func @transform_3(%arg0: i32) -> (i32, i32) {
    %c0_i32 = arith.constant 0 : i32
    %c0_i32_0 = arith.constant 0 : i32
    %c0_i32_1 = arith.constant 0 : i32
    return %c0_i32, %c0_i32_0 : i32, i32
  }
  func.func @transform_4(%arg0: i32) -> (i32, i32) {
    %c0_i32 = arith.constant 0 : i32
    %c0_i32_0 = arith.constant 0 : i32
    %c0_i32_1 = arith.constant 0 : i32
    return %c0_i32, %c0_i32_0 : i32, i32
  }
  func.func @transform_5(%arg0: i32) -> (i32, i32) {
    %c0_i32 = arith.constant 0 : i32
    %c0_i32_0 = arith.constant 0 : i32
    return %arg0, %c0_i32 : i32, i32
  }
}

</mosaic_0001>

<bundles_post_ra>
// kernel: _lambda_.1
= control target key start
LH: loop header
LB: loop body
LE: loop exit
PB: predicated region body
PF: predicated region fallthrough
CT: control target
= control target key end

     0   :  { %10 = vsyncpa [#allocation3], 0  ;;  %s461_s0 = inlined_call_operand.vmem [shape: f32[8,11], index: 0, kind: input, shape index: {}]   ;;  %s462_s1 = inlined_call_operand.hbm [shape: f32[11,128], index: 1, kind: input, shape index: {}]   ;;  %s463_s2 = inlined_call_operand.vmem [shape: f32[1,128], index: 2, kind: input, shape index: {}]   ;;  %s464_s3 = inlined_call_operand.hbm [shape: f32[128,128], index: 3, kind: input, shape index: {}]   ;;  %s465_s4 = inlined_call_operand.vmem [shape: f32[1,128], index: 4, kind: input, shape index: {}]   ;;  %s466_s5 = inlined_call_operand.vmem [shape: f32[8,128], index: 5, kind: output, shape index: {}]  }
   0x1   :  { %11 = vsyncpa [#allocation5], 0  ;;  %s387_s18 = smov [#allocation2]   ;;  %s339_s22 = scalar_lea.hbm %s462_s1, 256 }
   0x2   :  { %s19_s19 = sshll.u32 %s387_s18, 4  ;;  %p340_p0 = scmp.ne.s32.totalorder %s462_s1, %s339_s22  ;;  %s20_s19 = int_to_ptr.vmem [resolvable:$true] %s19_s19 }
   0x3   :  { %p343_p1 = scmp.lt.u32.totalorder %s339_s22, %s462_s1 }
   0x5   :  { %p345_p2 = pnand %p343_p1, %p340_p0 }
   0x7   :  { %348 = shalt.err (!%p345_p2)
}
   0x8   :  { %s349_s27 = scalar_lea.vmem %s20_s19, 256  ;;  %p354_p4 = scmp.lt.s32.totalorder %s20_s19, %s20_s19 }
   0x9   :  { %p350_p3 = scmp.ne.s32.totalorder %s20_s19, %s349_s27  ;;  %p355_p5 = scmp.lt.s32.totalorder %s349_s27, %s349_s27 }
   0xb   :  { %p356_p6 = por %p355_p5, %p354_p4 }
   0xd   :  { %p357_p7 = pnand %p356_p6, %p350_p3 }
   0xf   :  { %360 = shalt.err (!%p357_p7)
}
  0x10   :  { %s388_s28 = smov 128   ;;  %s389_s29 = smov 8  }
  0x11   :  { %25 = dma.hbm_to_vmem [thread:$0]  %s462_s1, 256, %s20_s19, [#allocation3], %s388_s28, %s388_s28, %s389_s29  }
  0x12   :  { %s390_s7 = smov [#allocation4]   ;;  %s361_s11 = scalar_lea.hbm %s464_s3, 2048 }
  0x13   :  { %s33_s8 = sshll.u32 %s390_s7, 4  ;;  %p362_p8 = scmp.ne.s32.totalorder %s464_s3, %s361_s11  ;;  %s34_s8 = int_to_ptr.vmem [resolvable:$true] %s33_s8 }
  0x14   :  { %p365_p9 = scmp.lt.u32.totalorder %s361_s11, %s464_s3 }
  0x16   :  { %p367_p10 = pnand %p365_p9, %p362_p8 }
  0x18   :  { %370 = shalt.err (!%p367_p10)
}
  0x19   :  { %s371_s16 = scalar_lea.vmem %s34_s8, 2048  ;;  %p376_p12 = scmp.lt.s32.totalorder %s34_s8, %s34_s8 }
  0x1a   :  { %p372_p11 = scmp.ne.s32.totalorder %s34_s8, %s371_s16  ;;  %p377_p13 = scmp.lt.s32.totalorder %s371_s16, %s371_s16 }
  0x1c   :  { %p378_p0 = por %p377_p13, %p376_p12 }
  0x1e   :  { %p379_p1 = pnand %p378_p0, %p372_p11 }
  0x20   :  { %382 = shalt.err (!%p379_p1)
}
  0x21   :  { %39 = dma.hbm_to_vmem [thread:$0]  %s464_s3, 2048, %s34_s8, [#allocation5], %s388_s28, %s388_s28, %s389_s29  }
  0x22   :  { %383 = dma.done.wait [#allocation3], 256  }
  0x23   :  { %384 = vsyncadd [#allocation3], 4294967040 }
  0x24   :  { %385 = dma.done.wait [#allocation5], 2048  }
  0x25   :  { %386 = vsyncadd [#allocation5], 4294965248  ;;  %v391_v0 = vmov 0.0|0.0   ;;  %vm392_vm0 = vmmov 0   ;;  %v393_v1 = vmov 0.0   ;;  %vm62_vm1 = vcmask 1042432  }
  0x26   :  { %303 = vmatprep.subr.bf16.mxu0 %v391_v0  ;;  %307 = vmatprep.subr.bf16.mxu1 %v391_v0  ;;  %v49_v2 = vld [vmem:[#allocation2] sm:$0xff]  ;;  %v50_v3 = vld [vmem:[#allocation2 + $0x8] sm:$0x7]  ;;  %vm394_vm2 = vmmov 1   ;;  %v137_v5 = vld [vmem:[#allocation4] sm:$0xff]  ;;  %vm58_vm4 = vcmask 89088  }
  0x27   :  { %265 = vmatprep.mubr.msk.f32.mxu0 %vm392_vm0, %v393_v1  ;;  %300 = vmatprep.mubr.msk.f32.mxu1 %vm392_vm0, %v393_v1  ;;  %vm305_vm3 = vmpackc.low %vm62_vm1, %vm394_vm2  ;;  %v304_v4 = vpack.c.bf16 %v50_v3, %v49_v2  ;;  %v138_v6 = vld [vmem:[#allocation4 + $0x8] sm:$0xff]  ;;  %v139_v7 = vld [vmem:[#allocation4 + $0x10] sm:$0xff] }
  0x28   :  { %v308_v8 = vpack.c.bf16 %v138_v6, %v137_v5  ;;  %v140_v9 = vld [vmem:[#allocation4 + $0x18] sm:$0xff]  ;;  %v48_v10 = vld [vmem:[%s461_s0] sm:$0xff]  ;;  %v141_v12 = vld [vmem:[#allocation4 + $0x20] sm:$0xff] }
  0x29   :  { %306 = vmatpush3.bf16.msk.msra.mxu0 %vm305_vm3, %v304_v4  ;;  %v311_v11 = vpack.c.bf16 %v140_v9, %v139_v7  ;;  %v142_v13 = vld [vmem:[#allocation4 + $0x28] sm:$0xff]  ;;  %v143_v15 = vld [vmem:[#allocation4 + $0x30] sm:$0xff]  ;;  %v144_v16 = vld [vmem:[#allocation4 + $0x38] sm:$0xff] }
  0x2a   :  { %309 = vmatpush3.bf16.msra.mxu1 %v308_v8  ;;  %v314_v14 = vpack.c.bf16 %v142_v13, %v141_v12  ;;  %v317_v17 = vpack.c.bf16 %v144_v16, %v143_v15  ;;  %v145_v18 = vld [vmem:[#allocation4 + $0x40] sm:$0xff]  ;;  %v146_v19 = vld [vmem:[#allocation4 + $0x48] sm:$0xff]  ;;  %v147_v21 = vld [vmem:[#allocation4 + $0x50] sm:$0xff] }
  0x2b   :  { %310 = vmatprep.subr.bf16.mxu1 %v391_v0  ;;  %v320_v20 = vpack.c.bf16 %v146_v19, %v145_v18  ;;  %v148_v22 = vld [vmem:[#allocation4 + $0x58] sm:$0xff]  ;;  %v149_v24 = vld [vmem:[#allocation4 + $0x60] sm:$0xff]  ;;  %v150_v25 = vld [vmem:[#allocation4 + $0x68] sm:$0xff] }
  0x2c   :  { %266 = vmatmul.mubr.msk.f32.vlgmr.msra.gmra.mrb[0].mxu0 %vm58_vm4, %v48_v10  ;;  %v323_v23 = vpack.c.bf16 %v148_v22, %v147_v21  ;;  %v326_v26 = vpack.c.bf16 %v150_v25, %v149_v24  ;;  %v151_v27 = vld [vmem:[#allocation4 + $0x70] sm:$0xff]  ;;  %v152_v28 = vld [vmem:[#allocation4 + $0x78] sm:$0xff] }
  0x2d   :  { %v329_v29 = vpack.c.bf16 %v152_v28, %v151_v27  ;;  %v237_v30 = vld [vmem:[%s463_s2] ss:$0 sm:$0xff] }
  0x2e   :  { %312 = vmatpush3.bf16.msra.mxu1 %v311_v11  ;;  %v240_v35 = vld [vmem:[%s465_s4] ss:$0 sm:$0xff] }
  0x2f   :  { %313 = vmatprep.subr.bf16.mxu1 %v391_v0 }
  0x32   :  { %315 = vmatpush3.bf16.msra.mxu1 %v314_v14 }
  0x33   :  { %316 = vmatprep.subr.bf16.mxu1 %v391_v0 }
  0x36   :  { %318 = vmatpush3.bf16.msra.mxu1 %v317_v17 }
  0x37   :  { %319 = vmatprep.subr.bf16.mxu1 %v391_v0 }
  0x3a   :  { %321 = vmatpush3.bf16.msra.mxu1 %v320_v20 }
  0x3b   :  { %322 = vmatprep.subr.bf16.mxu1 %v391_v0 }
  0x3e   :  { %324 = vmatpush3.bf16.msra.mxu1 %v323_v23 }
  0x3f   :  { %325 = vmatprep.subr.bf16.mxu1 %v391_v0 }
  0x42   :  { %327 = vmatpush3.bf16.msra.mxu1 %v326_v26 }
  0x43   :  { %328 = vmatprep.subr.bf16.mxu1 %v391_v0 }
  0x46   :  { %330 = vmatpush3.bf16.msra.mxu1 %v329_v29 }
  0xff   :  { %v132_v31 = vpop.f32.mrb[0].mxu0 }
 0x100   :  { %v133_v32 = vadd.f32 %v237_v30, %v132_v31  ;;  %v267_v33 = vpop.f32.mrb[1].mxu0 }
 0x102   :  { %v136_v34 = vmax.f32 %v133_v32, 0.0 }
 0x104   :  { %301 = vmatmul.mubr.f32.vlgmr.msra.gmra.mrb[0].mxu1 %v136_v34 }
 0x1d7   :  { %v226_v36 = vpop.f32.mrb[0].mxu1 }
 0x1d8   :  { %v227_v37 = vadd.f32 %v240_v35, %v226_v36  ;;  %v302_v38 = vpop.f32.mrb[1].mxu1 }
 0x1da   :  { %230 = vst [vmem:[%s466_s5] sm:$0xff] %v227_v37 }
 0x1db   :  { %235 = vsyncpa [#allocation3], 1 }
 0x1dc   :  { %236 = vsyncpa [#allocation5], 1 }

</bundles_post_ra>
